<compile_context>
chip_gen: v6e
topology: v6e:2x2x1
jax: 0.10.0
libtpu: 0.0.40
codegen_flags: <defaults>
</compile_context>

<pallas_src>
import functools
import math

import jax
import jax.numpy as jnp
from jax.experimental import pallas as pl
from jax.experimental.pallas import tpu as pltpu

MARGIN = 5.0
EPS = 1e-6          # torch F.pairwise_distance default eps
E_CONST = 2.71828   # the module uses the literal 2.71828, not math.e
CHUNK = 128         # rows per inner step == lane width -> label chunk is one (1,128) row


def _simi_loss_kernel(fl_ref, fr_ref, lab_ref, out_ref, *,
                      a, b, c, eps, n_valid, tile_rows, chunk):
    """One grid step: (tile_rows, D) rows of both feature streams -> one partial loss sum."""
    out_ref[...] = jnp.zeros_like(out_ref)
    row_base = pl.program_id(0) * tile_rows
    n_chunks = tile_rows // chunk

    @pl.loop(0, n_chunks)
    def _(ci):
        r0 = pl.multiple_of(ci * chunk, chunk)
        fl = fl_ref[pl.ds(r0, chunk), :].astype(jnp.float32)      # (chunk, D)
        fr = fr_ref[pl.ds(r0, chunk), :].astype(jnp.float32)      # (chunk, D)
        lab = lab_ref[pl.ds(ci, 1), :]                            # (1, chunk), lane-dense f32

        # p=1 pairwise distance with torch's eps convention: sum_d |x1 - x2 + eps|
        E = jnp.sum(jnp.abs(fl - fr + eps), axis=-1, keepdims=True)   # (chunk, 1)
        t_same = a * (E * E)                 # label == 1 branch: (2/Q) * E^2
        t_diff = b * jnp.exp(E * c)          # label == 0 branch: 2Q * e^(-2.77 E / Q)  (EUP)

        # Row-validity mask so padded tail rows contribute nothing to the sum.
        rid = row_base + r0 + jax.lax.broadcasted_iota(jnp.int32, (chunk, 1), 0)
        valid = (rid < n_valid).astype(jnp.float32)                    # (chunk, 1)

        # partial = sum_i valid_i * t_diff_i  +  sum_i lab_i * (t_same_i - t_diff_i)
        # (padded labels are zero, so the second term is already masked).
        s0 = jnp.sum(valid * t_diff, axis=0, keepdims=True)            # (1, 1) sublane reduce

        # Mixed-layout contraction: lab lives on lanes, per-row terms on sublanes -> use the
        # (idle) MXU.  Broadcasts are cheap (replicated sublanes / lane splat of 16 vregs).
        lhs = jnp.broadcast_to(lab, (8, chunk))                         # (8, chunk)
        rhs = jnp.broadcast_to(t_same - t_diff, (chunk, chunk))         # (chunk, chunk)
        s1 = jnp.dot(lhs, rhs, preferred_element_type=jnp.float32)[:1, :1]   # (1, 1)

        out_ref[...] += s0 + s1


def _choose_tiling(n, d, itemsize):
    """Pick rows-per-tile, number of tiles and an explicit scoped-VMEM limit."""
    align = CHUNK  # multiple of 128 also satisfies bf16 (16) / int8 (32) sublane packing
    try:
        vmem_bytes = int(pltpu.get_tpu_info().vmem_capacity_bytes)
    except Exception:  # pragma: no cover - conservative fallback (v7x per-TC physical)
        vmem_bytes = 64 << 20

    # Per-feature-tile byte budget: 2 inputs x 2 pipeline buffers must fit with headroom.
    # 12 MiB cap (128 MiB chips) / vmem//8 (-> 8 MiB on v7x's 64 MiB) amortizes the ~0.35us
    # fixed per-grid-step overhead to a few percent on every generation.
    per_tile = min(12 << 20, vmem_bytes // 8)
    row_bytes = max(1, d * itemsize)
    rows = max(align, (per_tile // row_bytes) // align * align)

    n_pad = ((n + align - 1) // align) * align
    rows = min(rows, n_pad)
    # Guarantee >= 2 grid steps whenever there is enough data so the "parallel" grid axis
    # can shard the stream across both TensorCores on v7x (megacore).
    if n_pad >= 2 * align:
        half = ((n_pad // 2 + align - 1) // align) * align
        rows = min(rows, half)
    n_tiles = (n + rows - 1) // rows

    # Explicit scoped-VMEM limit: what we actually use + headroom, never more than ~7/8 of
    # this generation's physical VMEM (v5e's 16 MiB scoped default is far too small for
    # these tiles; v7x only has 64 MiB physical per TC).
    n_chunks = rows // CHUNK
    needed = (4 * rows * row_bytes                               # 2 inputs x 2 buffers
              + 2 * (((n_chunks + 7) // 8) * 8) * CHUNK * 4      # lane-dense label buffers
              + 4 * CHUNK * d * 4                                # in-kernel f32 chunk temps
              + (1 << 20))                                       # out blocks / misc scratch
    vmem_limit = int(min(vmem_bytes * 7 // 8, needed + (16 << 20)))
    return rows, n_tiles, vmem_limit


def learn_simi_metri_loss(feature_l, feature_r, label, margin=MARGIN):
    """feature_l, feature_r: [N, D]; label: [N, 1] (or [N]). Returns scalar f32 loss.

    Features may be bf16 (halves HBM traffic); the kernel computes in f32.
    """
    N, D = feature_l.shape
    itemsize = jnp.dtype(feature_l.dtype).itemsize

    TN, n_tiles, vmem_limit = _choose_tiling(N, D, itemsize)
    n_chunks = TN // CHUNK
    N_pad = n_tiles * TN

    lab = label.reshape(-1).astype(jnp.float32)
    if N_pad != N:
        pad = N_pad - N
        feature_l = jnp.pad(feature_l, ((0, pad), (0, 0)))
        feature_r = jnp.pad(feature_r, ((0, pad), (0, 0)))
        lab = jnp.pad(lab, (0, pad))                         # padded labels are zero
    lab = lab.reshape(n_tiles, n_chunks, CHUNK)              # lane-dense label layout

    # Fold scalar constants at trace time.
    a = 2.0 / margin
    b = 2.0 * margin
    c = (-2.77 / margin) * math.log(E_CONST)
    kernel = functools.partial(_simi_loss_kernel, a=a, b=b, c=c, eps=EPS,
                               n_valid=N, tile_rows=TN, chunk=CHUNK)

    bytes_accessed = int(2 * N_pad * D * itemsize + N_pad * 4 + n_tiles * 4)
    cost = pl.CostEstimate(flops=int(4 * N_pad * D + 2048 * N_pad + 12 * N_pad),
                           transcendentals=int(N_pad),
                           bytes_accessed=bytes_accessed)

    partials = pl.pallas_call(
        kernel,
        out_shape=jax.ShapeDtypeStruct((n_tiles, 1, 1), jnp.float32),
        grid=(n_tiles,),
        in_specs=[
            pl.BlockSpec((TN, D), lambda i: (i, 0)),
            pl.BlockSpec((TN, D), lambda i: (i, 0)),
            pl.BlockSpec((None, n_chunks, CHUNK), lambda i: (i, 0, 0)),
        ],
        out_specs=pl.BlockSpec((None, 1, 1), lambda i: (i, 0, 0)),
        compiler_params=pltpu.CompilerParams(
            dimension_semantics=("parallel",),
            vmem_limit_bytes=vmem_limit),
        cost_estimate=cost,
    )(feature_l, feature_r, lab)

    # Tiny final reduction: one partial per tile, already masked to the real N rows.
    return jnp.sum(partials) / jnp.float32(N)


def _reference(feature_l, feature_r, label, margin=MARGIN):
    fl = feature_l.astype(jnp.float32)
    fr = feature_r.astype(jnp.float32)
    E = jnp.sum(jnp.abs(fl - fr + EPS), axis=-1, keepdims=True)
    Q = margin
    loss = label * (2.0 / Q) * E ** 2 + (1.0 - label) * 2.0 * Q * (E_CONST ** (-2.77 * E / Q))
    return loss.mean()


if __name__ == "__main__":
    key = jax.random.PRNGKey(0)

    # Small shape consistent with the module (feature pairs + 0/1 same/different label).
    k1, k2, k3 = jax.random.split(key, 3)
    N, D = 8, 32
    feature_l = jax.random.normal(k1, (N, D), dtype=jnp.float32)
    feature_r = jax.random.normal(k2, (N, D), dtype=jnp.float32)
    label = jax.random.bernoulli(k3, 0.5, (N, 1)).astype(jnp.float32)

    out = jax.block_until_ready(learn_simi_metri_loss(feature_l, feature_r, label))
    ref = _reference(feature_l, feature_r, label)
    assert jnp.allclose(out, ref, rtol=1e-4, atol=1e-4), (out, ref)

    # Secondary check: exercises multi-tile grid (both TensorCores on v7x), the multi-chunk
    # inner loop, and the ragged-N row masking.
    k4, k5, k6 = jax.random.split(jax.random.PRNGKey(1), 3)
    N2, D2 = 1200, 256
    fl2 = jax.random.normal(k4, (N2, D2), dtype=jnp.float32)
    fr2 = jax.random.normal(k5, (N2, D2), dtype=jnp.float32)
    lab2 = jax.random.bernoulli(k6, 0.5, (N2, 1)).astype(jnp.float32)

    out2 = jax.block_until_ready(learn_simi_metri_loss(fl2, fr2, lab2))
    ref2 = _reference(fl2, fr2, lab2)
    assert jnp.allclose(out2, ref2, rtol=1e-4, atol=1e-4), (out2, ref2)

    print("KERNEL_OK")
</pallas_src>

<mosaic_0001>
module attributes {stable_mosaic.version = 11 : i64} {
  func.func @_simi_loss_kernel(%arg0: i32, %arg1: memref<128x32xf32, #tpu.memory_space<vmem>>, %arg2: memref<128x32xf32, #tpu.memory_space<vmem>>, %arg3: memref<1x1x128xf32, #tpu.memory_space<vmem>>, %arg4: memref<1x1x1xf32, #tpu.memory_space<vmem>>) attributes {dimension_semantics = [#tpu.dimension_semantics<parallel>], iteration_bounds = array<i64: 1>, scalar_prefetch = 0 : i64, scratch_operands = 0 : i64, tpu.core_type = #tpu.core_type<tc>, window_params = [{transform_indices = @transform_0, window_bounds = array<i64: 128, 32>}, {transform_indices = @transform_1, window_bounds = array<i64: 128, 32>}, {transform_indices = @transform_2, window_bounds = array<i64: 1, 1, 128>}, {transform_indices = @transform_3, window_bounds = array<i64: 1, 1, 1>}]} {
    %cst = arith.constant 0.000000e+00 : f32
    %0 = vector.broadcast %cst : f32 to vector<1x1xf32>
    %c0 = arith.constant 0 : index
    %c0_0 = arith.constant 0 : index
    %c0_1 = arith.constant 0 : index
    %1 = vector.load %arg4[%c0, %c0_0, %c0_1] : memref<1x1x1xf32, #tpu.memory_space<vmem>>, vector<1x1x1xf32>
    %2 = vector.shape_cast %1 : vector<1x1x1xf32> to vector<1x1xf32>
    %3 = vector.shape_cast %0 : vector<1x1xf32> to vector<1x1x1xf32>
    tpu.vector_store %arg4[%c0, %c0_0, %c0_1], %3 {strides = array<i32>} : memref<1x1x1xf32, #tpu.memory_space<vmem>>, vector<1x1x1xf32>,
    %c128_i32 = arith.constant 128 : i32
    %4 = arith.muli %arg0, %c128_i32 : i32
    %c0_i32 = arith.constant 0 : i32
    %c1_i32 = arith.constant 1 : i32
    %5 = arith.muli %c0_i32, %c1_i32 : i32
    %c0_i32_2 = arith.constant 0 : i32
    %6 = arith.addi %c0_i32_2, %5 : i32
    %c128_i32_3 = arith.constant 128 : i32
    %7 = arith.muli %6, %c128_i32_3 : i32
    %8 = tpu.assume_multiple %7, 128 : i32
    %9 = arith.index_cast %8 : i32 to index
    %c0_4 = arith.constant 0 : index
    %10 = vector.load %arg1[%9, %c0_4] : memref<128x32xf32, #tpu.memory_space<vmem>>, vector<128x32xf32>
    %11 = arith.index_cast %8 : i32 to index
    %c0_5 = arith.constant 0 : index
    %12 = vector.load %arg2[%11, %c0_5] : memref<128x32xf32, #tpu.memory_space<vmem>>, vector<128x32xf32>
    %c0_6 = arith.constant 0 : index
    %13 = arith.index_cast %6 : i32 to index
    %c0_7 = arith.constant 0 : index
    %14 = vector.load %arg3[%c0_6, %13, %c0_7] : memref<1x1x128xf32, #tpu.memory_space<vmem>>, vector<1x1x128xf32>
    %15 = vector.shape_cast %14 : vector<1x1x128xf32> to vector<1x128xf32>
    %16 = arith.subf %10, %12 : vector<128x32xf32>
    %cst_8 = arith.constant 9.99999997E-7 : f32
    %17 = vector.broadcast %cst_8 : f32 to vector<128x32xf32>
    %18 = arith.addf %16, %17 : vector<128x32xf32>
    %19 = math.absf %18 : vector<128x32xf32>
    %cst_9 = arith.constant dense<0.000000e+00> : vector<128xf32>
    %20 = vector.multi_reduction <add>, %19, %cst_9 [1] : vector<128x32xf32> to vector<128xf32>
    %21 = vector.shape_cast %20 : vector<128xf32> to vector<128x1xf32>
    %22 = arith.mulf %21, %21 : vector<128x1xf32>
    %cst_10 = arith.constant 4.000000e-01 : f32
    %23 = vector.broadcast %cst_10 : f32 to vector<128x1xf32>
    %24 = arith.mulf %23, %22 : vector<128x1xf32>
    %cst_11 = arith.constant -0.553999603 : f32
    %25 = vector.broadcast %cst_11 : f32 to vector<128x1xf32>
    %26 = arith.mulf %21, %25 : vector<128x1xf32>
    %27 = math.exp %26 : vector<128x1xf32>
    %cst_12 = arith.constant 1.000000e+01 : f32
    %28 = vector.broadcast %cst_12 : f32 to vector<128x1xf32>
    %29 = arith.mulf %28, %27 : vector<128x1xf32>
    %30 = arith.addi %4, %8 : i32
    %31 = tpu.iota {dimensions = array<i32: 0>} : vector<128x1xi32>
    %32 = vector.broadcast %30 : i32 to vector<128x1xi32>
    %33 = arith.addi %32, %31 : vector<128x1xi32>
    %c8_i32 = arith.constant 8 : i32
    %34 = vector.broadcast %c8_i32 : i32 to vector<128x1xi32>
    %35 = arith.cmpi slt, %33, %34 : vector<128x1xi32>
    %36 = arith.extui %35 : vector<128x1xi1> to vector<128x1xi32>
    %37 = arith.sitofp %36 : vector<128x1xi32> to vector<128x1xf32>
    %38 = arith.mulf %37, %29 : vector<128x1xf32>
    %cst_13 = arith.constant dense<0.000000e+00> : vector<1xf32>
    %39 = vector.multi_reduction <add>, %38, %cst_13 [0] : vector<128x1xf32> to vector<1xf32>
    %40 = vector.shape_cast %39 : vector<1xf32> to vector<1x1xf32>
    %41 = vector.shape_cast %15 : vector<1x128xf32> to vector<1x128xf32>
    %42 = vector.broadcast %41 : vector<1x128xf32> to vector<8x128xf32>
    %43 = arith.subf %24, %29 : vector<128x1xf32>
    %44 = vector.shape_cast %43 : vector<128x1xf32> to vector<128x1xf32>
    %45 = vector.broadcast %44 : vector<128x1xf32> to vector<128x128xf32>
    %cst_14 = arith.constant dense<0.000000e+00> : vector<8x128xf32>
    %46 = tpu.matmul %42, %45, %cst_14 {dimension_numbers = #tpu.dot_dimension_numbers<[1], [0], [0], [1], [0, 0, 1, 1], [], []>} : vector<8x128xf32>, vector<128x128xf32>, vector<8x128xf32> -> vector<8x128xf32>
    %47 = vector.extract_strided_slice %46 {offsets = [0, 0], sizes = [1, 1], strides = [1, 1]} : vector<8x128xf32> to vector<1x1xf32>
    %c0_15 = arith.constant 0 : index
    %c0_16 = arith.constant 0 : index
    %c0_17 = arith.constant 0 : index
    %48 = vector.load %arg4[%c0_15, %c0_16, %c0_17] : memref<1x1x1xf32, #tpu.memory_space<vmem>>, vector<1x1x1xf32>
    %49 = vector.shape_cast %48 : vector<1x1x1xf32> to vector<1x1xf32>
    %50 = arith.addf %40, %47 : vector<1x1xf32>
    %51 = arith.addf %49, %50 : vector<1x1xf32>
    %c0_18 = arith.constant 0 : index
    %c0_19 = arith.constant 0 : index
    %c0_20 = arith.constant 0 : index
    %52 = vector.load %arg4[%c0_18, %c0_19, %c0_20] : memref<1x1x1xf32, #tpu.memory_space<vmem>>, vector<1x1x1xf32>
    %53 = vector.shape_cast %52 : vector<1x1x1xf32> to vector<1x1xf32>
    %54 = vector.shape_cast %51 : vector<1x1xf32> to vector<1x1x1xf32>
    tpu.vector_store %arg4[%c0_18, %c0_19, %c0_20], %54 {strides = array<i32>} : memref<1x1x1xf32, #tpu.memory_space<vmem>>, vector<1x1x1xf32>,
    %c1_i32_21 = arith.constant 1 : i32
    return
  }
  func.func @transform_0(%arg0: i32) -> (i32, i32) {
    %c0_i32 = arith.constant 0 : i32
    %c0_i32_0 = arith.constant 0 : i32
    return %arg0, %c0_i32 : i32, i32
  }
  func.func @transform_1(%arg0: i32) -> (i32, i32) {
    %c0_i32 = arith.constant 0 : i32
    %c0_i32_0 = arith.constant 0 : i32
    return %arg0, %c0_i32 : i32, i32
  }
  func.func @transform_2(%arg0: i32) -> (i32, i32, i32) {
    %c0_i32 = arith.constant 0 : i32
    %c0_i32_0 = arith.constant 0 : i32
    %c0_i32_1 = arith.constant 0 : i32
    return %arg0, %c0_i32, %c0_i32_0 : i32, i32, i32
  }
  func.func @transform_3(%arg0: i32) -> (i32, i32, i32) {
    %c0_i32 = arith.constant 0 : i32
    %c0_i32_0 = arith.constant 0 : i32
    %c0_i32_1 = arith.constant 0 : i32
    return %arg0, %c0_i32, %c0_i32_0 : i32, i32, i32
  }
}

</mosaic_0001>

<bundles_post_ra>
// kernel: tpu_custom_call.1
= control target key start
LH: loop header
LB: loop body
LE: loop exit
PB: predicated region body
PF: predicated region fallthrough
CT: control target
= control target key end

     0   :  { %vm99_vm0 = vcmask 261120   ;;  %s826_s0 = inlined_call_operand.vmem [shape: f32[128,32], index: 0, kind: input, shape index: {}]   ;;  %s827_s1 = inlined_call_operand.vmem [shape: f32[128,32], index: 1, kind: input, shape index: {}]   ;;  %s828_s2 = inlined_call_operand.vmem [shape: f32[1,1,128], index: 2, kind: input, shape index: {}]   ;;  %s829_s3 = inlined_call_operand.hbm [shape: f32[1,1,1], index: 3, kind: output, shape index: {}]  }
   0x1   :  { %v33_v0 = vld [vmem:[%s826_s0 + $0x78] sm:$0xff]  ;;  %v31_v2 = vld [vmem:[%s826_s0 + $0x68] sm:$0xff]  ;;  %v32_v5 = vld [vmem:[%s826_s0 + $0x70] sm:$0xff] }
   0x2   :  { %v49_v1 = vld [vmem:[%s827_s1 + $0x78] sm:$0xff]  ;;  %v47_v4 = vld [vmem:[%s827_s1 + $0x68] sm:$0xff]  ;;  %v48_v6 = vld [vmem:[%s827_s1 + $0x70] sm:$0xff] }
   0x3   :  { %v66_v3 = vsub.f32 %v33_v0, %v49_v1  ;;  %v64_v7 = vsub.f32 %v31_v2, %v47_v4  ;;  %v65_v8 = vsub.f32 %v32_v5, %v48_v6  ;;  %v30_v9 = vld [vmem:[%s826_s0 + $0x60] sm:$0xff]  ;;  %v29_v11 = vld [vmem:[%s826_s0 + $0x58] sm:$0xff]  ;;  %v28_v15 = vld [vmem:[%s826_s0 + $0x50] sm:$0xff] }
   0x4   :  { %v46_v10 = vld [vmem:[%s827_s1 + $0x60] sm:$0xff]  ;;  %v45_v14 = vld [vmem:[%s827_s1 + $0x58] sm:$0xff]  ;;  %v44_v16 = vld [vmem:[%s827_s1 + $0x50] sm:$0xff] }
   0x5   :  { %v82_v12 = vadd.f32 1e-06, %v66_v3  ;;  %v63_v13 = vsub.f32 %v30_v9, %v46_v10  ;;  %v80_v17 = vadd.f32 1e-06, %v64_v7  ;;  %v81_v18 = vadd.f32 1e-06, %v65_v8 }
   0x6   :  { %v62_v19 = vsub.f32 %v29_v11, %v45_v14  ;;  %v61_v20 = vsub.f32 %v28_v15, %v44_v16  ;;  %v27_v21 = vld [vmem:[%s826_s0 + $0x48] sm:$0xff]  ;;  %v26_v26 = vld [vmem:[%s826_s0 + $0x40] sm:$0xff]  ;;  %v25_v35 = vld [vmem:[%s826_s0 + $0x38] sm:$0xff] }
   0x7   :  { %v43_v22 = vld [vmem:[%s827_s1 + $0x48] sm:$0xff]  ;;  %v98_v23 = vand.u32 2147483647, %v82_v12  ;;  %v79_v24 = vadd.f32 1e-06, %v63_v13  ;;  %v42_v27 = vld [vmem:[%s827_s1 + $0x40] sm:$0xff] }
   0x8   :  { %v60_v25 = vsub.f32 %v27_v21, %v43_v22  ;;  %v96_v28 = vand.u32 2147483647, %v80_v17  ;;  %v97_v29 = vand.u32 2147483647, %v81_v18  ;;  %v78_v30 = vadd.f32 1e-06, %v62_v19 }
   0x9   :  { %v59_v31 = vsub.f32 %v26_v26, %v42_v27  ;;  %v145_v32 = vsel %vm99_vm0, %v98_v23, 0.0  ;;  %v95_v33 = vand.u32 2147483647, %v79_v24  ;;  %v77_v34 = vadd.f32 1e-06, %v61_v20  ;;  %v41_v41 = vld [vmem:[%s827_s1 + $0x38] sm:$0xff] }
   0xa   :  { %146 = vadd.xlane.f32.xlu0 %v145_v32  ;;  %v139_v36 = vsel %vm99_vm0, %v96_v28, 0.0  ;;  %v76_v37 = vadd.f32 1e-06, %v60_v25  ;;  %v142_v38 = vsel %vm99_vm0, %v97_v29, 0.0  ;;  %v94_v39 = vand.u32 2147483647, %v78_v30 }
   0xb   :  { %140 = vadd.xlane.f32.xlu1 %v139_v36  ;;  %v75_v40 = vadd.f32 1e-06, %v59_v31  ;;  %v136_v42 = vsel %vm99_vm0, %v95_v33, 0.0  ;;  %v93_v43 = vand.u32 2147483647, %v77_v34  ;;  %v58_v44 = vsub.f32 %v25_v35, %v41_v41  ;;  %v24_v45 = vld [vmem:[%s826_s0 + $0x30] sm:$0xff] }
   0xc   :  { %v40_v46 = vld [vmem:[%s827_s1 + $0x30] sm:$0xff]  ;;  %v23_v47 = vld [vmem:[%s826_s0 + $0x28] sm:$0xff]  ;;  %v22_v50 = vld [vmem:[%s826_s0 + $0x20] sm:$0xff]  ;;  %v92_v52 = vand.u32 2147483647, %v76_v37  ;;  %v133_v53 = vsel %vm99_vm0, %v94_v39, 0.0 }
   0xd   :  { %v57_v48 = vsub.f32 %v24_v45, %v40_v46  ;;  %v39_v49 = vld [vmem:[%s827_s1 + $0x28] sm:$0xff]  ;;  %v38_v51 = vld [vmem:[%s827_s1 + $0x20] sm:$0xff]  ;;  %v91_v54 = vand.u32 2147483647, %v75_v40  ;;  %v74_v55 = vadd.f32 1e-06, %v58_v44 }
   0xe   :  { %143 = vadd.xlane.f32.xlu0 %v142_v38  ;;  %v56_v56 = vsub.f32 %v23_v47, %v39_v49  ;;  %v130_v57 = vsel %vm99_vm0, %v93_v43, 0.0  ;;  %v55_v59 = vsub.f32 %v22_v50, %v38_v51  ;;  %v21_v60 = vld [vmem:[%s826_s0 + $0x18] sm:$0xff]  ;;  %v20_v62 = vld [vmem:[%s826_s0 + $0x10] sm:$0xff]  ;;  %v127_v0 = vsel %vm99_vm0, %v92_v52, 0.0  ;;  %v19_v8 = vld [vmem:[%s826_s0 + $0x8] sm:$0xff] }
   0xf   :  { %137 = vadd.xlane.f32.xlu1 %v136_v42  ;;  %v73_v58 = vadd.f32 1e-06, %v57_v48  ;;  %v37_v61 = vld [vmem:[%s827_s1 + $0x18] sm:$0xff]  ;;  %v36_v63 = vld [vmem:[%s827_s1 + $0x10] sm:$0xff]  ;;  %v124_v1 = vsel %vm99_vm0, %v91_v54, 0.0  ;;  %v35_v9 = vld [vmem:[%s827_s1 + $0x8] sm:$0xff] }
  0x10   :  { %v90_v2 = vand.u32 2147483647, %v74_v55  ;;  %v72_v3 = vadd.f32 1e-06, %v56_v56  ;;  %v54_v4 = vsub.f32 %v21_v60, %v37_v61  ;;  %v71_v6 = vadd.f32 1e-06, %v55_v59 }
  0x11   :  { %v89_v5 = vand.u32 2147483647, %v73_v58  ;;  %v53_v7 = vsub.f32 %v20_v62, %v36_v63  ;;  %v18_v10 = vld [vmem:[%s826_s0] sm:$0xff] }
  0x12   :  { %134 = vadd.xlane.f32.xlu0 %v133_v53  ;;  %v34_v11 = vld [vmem:[%s827_s1] sm:$0xff] }
  0x13   :  { %131 = vadd.xlane.f32.xlu1 %v130_v57 }
  0x14   :  { %8 = vsyncpa [#allocation3], 0  ;;  %v121_v12 = vsel %vm99_vm0, %v90_v2, 0.0  ;;  %v88_v13 = vand.u32 2147483647, %v72_v3  ;;  %v52_v15 = vsub.f32 %v19_v8, %v35_v9  ;;  %v118_v16 = vsel %vm99_vm0, %v89_v5, 0.0 }
  0x15   :  { %v70_v14 = vadd.f32 1e-06, %v54_v4  ;;  %v87_v17 = vand.u32 2147483647, %v71_v6  ;;  %v69_v18 = vadd.f32 1e-06, %v53_v7  ;;  %v51_v19 = vsub.f32 %v18_v10, %v34_v11 }
  0x16   :  { %128 = vadd.xlane.f32.xlu0 %v127_v0  ;;  %v115_v20 = vsel %vm99_vm0, %v88_v13, 0.0  ;;  %v68_v22 = vadd.f32 1e-06, %v52_v15  ;;  %v584_v32 = vmov 0.0   ;;  %vm585_vm1 = vmmov 0  }
  0x17   :  { %125 = vadd.xlane.f32.xlu1 %v124_v1  ;;  %v86_v21 = vand.u32 2147483647, %v70_v14  ;;  %v112_v23 = vsel %vm99_vm0, %v87_v17, 0.0  ;;  %v85_v24 = vand.u32 2147483647, %v69_v18  ;;  %492 = vmatprep.subr.mxu0 %v584_v32  ;;  %vm15_vm2 = vcmask 0  }
  0x18   :  { %v67_v25 = vadd.f32 1e-06, %v51_v19  ;;  %v84_v27 = vand.u32 2147483647, %v68_v22  ;;  %524 = vmatprep.mubr.msk.f32.mxu0 %vm585_vm1, %v584_v32  ;;  %16 = vst.msk [vmem:[#allocation2] sm:$0x1] %vm15_vm2, %v584_v32 }
  0x19   :  { %v109_v26 = vsel %vm99_vm0, %v86_v21, 0.0  ;;  %v106_v28 = vsel %vm99_vm0, %v85_v24, 0.0 }
  0x1a   :  { %122 = vadd.xlane.f32.xlu0 %v121_v12  ;;  %v83_v29 = vand.u32 2147483647, %v67_v25  ;;  %v103_v30 = vsel %vm99_vm0, %v84_v27, 0.0 }
  0x1b   :  { %119 = vadd.xlane.f32.xlu1 %v118_v16 }
  0x1c   :  { %v100_v31 = vsel %vm99_vm0, %v83_v29, 0.0 }
  0x1e   :  { %116 = vadd.xlane.f32.xlu0 %v115_v20 }
  0x1f   :  { %113 = vadd.xlane.f32.xlu1 %v112_v23 }
  0x22   :  { %110 = vadd.xlane.f32.xlu0 %v109_v26 }
  0x23   :  { %107 = vadd.xlane.f32.xlu1 %v106_v28 }
  0x26   :  { %104 = vadd.xlane.f32.xlu0 %v103_v30 }
  0x27   :  { %101 = vadd.xlane.f32.xlu1 %v100_v31 }
  0x93   :  { %v147_v33 = vpop.xlane.xlu0 %146 }
  0x94   :  { %v195_v34 = vmul.f32 -0.5539996, %v147_v33  ;;  %v141_v35 = vpop.xlane.xlu1 %140  ;;  %v163_v56 = vmul.f32 %v147_v33, %v147_v33 }
  0x95   :  { %v193_v36 = vmul.f32 -0.5539996, %v141_v35  ;;  %v161_v6 = vmul.f32 %v141_v35, %v141_v35 }
  0x96   :  { %v226_v37 = vmul.f32 1.442695, %v195_v34  ;;  %v179_v1 = vmul.f32 0.4, %v163_v56 }
  0x97   :  { %v222_v38 = vmul.f32 1.442695, %v193_v36  ;;  %v144_v39 = vpop.xlane.xlu0 %143  ;;  %v177_v20 = vmul.f32 0.4, %v161_v6 }
  0x98   :  { %530 = vpow2.f32 %v226_v37  ;;  %v194_v40 = vmul.f32 -0.5539996, %v144_v39  ;;  %v138_v41 = vpop.xlane.xlu1 %137  ;;  %v162_v2 = vmul.f32 %v144_v39, %v144_v39 }
  0x99   :  { %v192_v42 = vmul.f32 -0.5539996, %v138_v41  ;;  %532 = vpow2.f32 %v222_v38  ;;  %v160_v16 = vmul.f32 %v138_v41, %v138_v41 }
  0x9a   :  { %v224_v43 = vmul.f32 1.442695, %v194_v40  ;;  %v178_v15 = vmul.f32 0.4, %v162_v2 }
  0x9b   :  { %v220_v44 = vmul.f32 1.442695, %v192_v42  ;;  %v135_v45 = vpop.xlane.xlu0 %134  ;;  %v176_v31 = vmul.f32 0.4, %v160_v16 }
  0x9c   :  { %534 = vpow2.f32 %v224_v43  ;;  %v191_v46 = vmul.f32 -0.5539996, %v135_v45  ;;  %v132_v47 = vpop.xlane.xlu1 %131  ;;  %v159_v21 = vmul.f32 %v135_v45, %v135_v45 }
  0x9d   :  { %536 = vpow2.f32 %v220_v44  ;;  %v190_v48 = vmul.f32 -0.5539996, %v132_v47  ;;  %v158_v29 = vmul.f32 %v132_v47, %v132_v47 }
  0x9e   :  { %v218_v49 = vmul.f32 1.442695, %v191_v46  ;;  %v175_v37 = vmul.f32 0.4, %v159_v21 }
  0x9f   :  { %v216_v50 = vmul.f32 1.442695, %v190_v48  ;;  %v129_v51 = vpop.xlane.xlu0 %128  ;;  %v174_v46 = vmul.f32 0.4, %v158_v29 }
  0xa0   :  { %538 = vpow2.f32 %v218_v49  ;;  %v189_v52 = vmul.f32 -0.5539996, %v129_v51  ;;  %v723_v53 = vpop.xlane.xlu1 %125  ;;  %v157_v38 = vmul.f32 %v129_v51, %v129_v51 }
  0xa1   :  { %540 = vpow2.f32 %v216_v50  ;;  %v188_v54 = vmul.f32 -0.5539996, %v723_v53  ;;  %v156_v48 = vmul.f32 %v723_v53, %v723_v53 }
  0xa2   :  { %v214_v55 = vmul.f32 1.442695, %v189_v52  ;;  %v173_v52 = vmul.f32 0.4, %v157_v38 }
  0xa3   :  { %v212_v57 = vmul.f32 1.442695, %v188_v54  ;;  %v726_v58 = vpop.xlane.xlu0 %122 }
  0xa4   :  { %542 = vpow2.f32 %v214_v55  ;;  %v187_v59 = vmul.f32 -0.5539996, %v726_v58  ;;  %v729_v60 = vpop.xlane.xlu1 %119  ;;  %v155_v55 = vmul.f32 %v726_v58, %v726_v58 }
  0xa5   :  { %v531_v61 = vpop.eup %530  ;;  %544 = vpow2.f32 %v212_v57  ;;  %v186_v62 = vmul.f32 -0.5539996, %v729_v60 }
  0xa6   :  { %v210_v63 = vmul.f32 1.442695, %v187_v59  ;;  %v732_v0 = vmul.f32 10.0, %v531_v61  ;;  %v533_v5 = vpop.eup %532  ;;  %v172_v59 = vmul.f32 0.4, %v156_v48  ;;  %v154_v61 = vmul.f32 %v729_v60, %v729_v60 }
  0xa7   :  { %v208_v3 = vmul.f32 1.442695, %v186_v62  ;;  %v734_v4 = vpop.xlane.xlu0 %116  ;;  %v745_v19 = vmul.f32 10.0, %v533_v5 }
  0xa8   :  { %546 = vpow2.f32 %v210_v63  ;;  %v185_v7 = vmul.f32 -0.5539996, %v734_v4  ;;  %v737_v8 = vpop.xlane.xlu1 %113  ;;  %v385_v11 = vsub.f32 %v179_v1, %v732_v0  ;;  %v171_v1 = vmul.f32 0.4, %v155_v55 }
  0xa9   :  { %v535_v9 = vpop.eup %534  ;;  %548 = vpow2.f32 %v208_v3  ;;  %v184_v10 = vmul.f32 -0.5539996, %v737_v8  ;;  %v383_v35 = vsub.f32 %v177_v20, %v745_v19  ;;  %v153_v2 = vmul.f32 %v734_v4, %v734_v4 }
  0xaa   :  { %v537_v12 = vpop.eup %536  ;;  %v206_v13 = vmul.f32 1.442695, %v185_v7  ;;  %v741_v14 = vmul.f32 10.0, %v535_v9  ;;  %493 = vmatpush3.msra.mxu0 %v385_v11  ;;  %v170_v60 = vmul.f32 0.4, %v154_v61  ;;  %v152_v7 = vmul.f32 %v737_v8, %v737_v8 }
  0xab   :  { %v204_v17 = vmul.f32 1.442695, %v184_v10  ;;  %v743_v18 = vpop.xlane.xlu0 %110  ;;  %494 = vmatprep.subr.mxu0 %v584_v32  ;;  %v753_v27 = vmul.f32 10.0, %v537_v12  ;;  %v169_v12 = vmul.f32 0.4, %v153_v2 }
  0xac   :  { %550 = vpow2.f32 %v206_v13  ;;  %v183_v22 = vmul.f32 -0.5539996, %v743_v18  ;;  %v748_v23 = vpop.xlane.xlu1 %107  ;;  %v384_v26 = vsub.f32 %v178_v15, %v741_v14  ;;  %v151_v4 = vmul.f32 %v743_v18, %v743_v18 }
  0xad   :  { %v539_v24 = vpop.eup %538  ;;  %552 = vpow2.f32 %v204_v17  ;;  %v182_v25 = vmul.f32 -0.5539996, %v748_v23  ;;  %v382_v43 = vsub.f32 %v176_v31, %v753_v27  ;;  %v168_v17 = vmul.f32 0.4, %v152_v7 }
  0xae   :  { %v541_v28 = vpop.eup %540  ;;  %v202_v30 = vmul.f32 1.442695, %v183_v22  ;;  %495 = vmatpush3.msra.mxu0 %v384_v26  ;;  %v758_v36 = vmul.f32 10.0, %v539_v24  ;;  %v150_v8 = vmul.f32 %v748_v23, %v748_v23  ;;  %v167_v24 = vmul.f32 0.4, %v151_v4 }
  0xaf   :  { %v200_v33 = vmul.f32 1.442695, %v182_v25  ;;  %v755_v34 = vpop.xlane.xlu0 %104  ;;  %496 = vmatprep.subr.mxu0 %v584_v32  ;;  %v766_v44 = vmul.f32 10.0, %v541_v28 }
  0xb0   :  { %554 = vpow2.f32 %v202_v30  ;;  %v181_v39 = vmul.f32 -0.5539996, %v755_v34  ;;  %v761_v40 = vpop.xlane.xlu1 %101  ;;  %497 = vmatpush3.msra.mxu0 %v383_v35  ;;  %v381_v50 = vsub.f32 %v175_v37, %v758_v36  ;;  %v149_v18 = vmul.f32 %v755_v34, %v755_v34 }
  0xb1   :  { %v543_v41 = vpop.eup %542  ;;  %556 = vpow2.f32 %v200_v33  ;;  %v180_v42 = vmul.f32 -0.5539996, %v761_v40  ;;  %498 = vmatprep.subr.mxu0 %v584_v32  ;;  %v380_v56 = vsub.f32 %v174_v46, %v766_v44  ;;  %v166_v30 = vmul.f32 0.4, %v150_v8  ;;  %v474_v46 = vld [vmem:[%s828_s2] ss:$0 sm:$0xff] }
  0xb2   :  { %v545_v45 = vpop.eup %544  ;;  %v198_v47 = vmul.f32 1.442695, %v181_v39  ;;  %499 = vmatpush3.msra.mxu0 %v382_v43  ;;  %v772_v51 = vmul.f32 10.0, %v543_v41  ;;  %v148_v23 = vmul.f32 %v761_v40, %v761_v40  ;;  %v165_v37 = vmul.f32 0.4, %v149_v18  ;;  %s586_s2 = smov [#allocation2]  }
  0xb3   :  { %v196_v49 = vmul.f32 1.442695, %v180_v42  ;;  %500 = vmatprep.subr.mxu0 %v584_v32  ;;  %v778_v57 = vmul.f32 10.0, %v545_v45  ;;  %s466_s22 = sshll.u32 %s586_s2, 4  ;;  %s467_s22 = int_to_ptr.vmem [resolvable:$true] %s466_s22 }
  0xb4   :  { %558 = vpow2.f32 %v198_v47  ;;  %501 = vmatpush3.msra.mxu0 %v381_v50  ;;  %v379_v62 = vsub.f32 %v173_v52, %v772_v51  ;;  %v164_v42 = vmul.f32 0.4, %v148_v23  ;;  %v336_v61 = vmul.f32 0.0, %v772_v51  ;;  %s562_s23 = scalar_lea.vmem %s467_s22, 16  ;;  %s566_s24 = scalar_lea.vmem %s467_s22, 32 }
  0xb5   :  { %v547_v54 = vpop.eup %546  ;;  %560 = vpow2.f32 %v196_v49  ;;  %502 = vmatprep.subr.mxu0 %v584_v32  ;;  %v378_v3 = vsub.f32 %v172_v59, %v778_v57  ;;  %p563_p0 = scmp.ne.s32.totalorder %s467_s22, %s562_s23  ;;  %p567_p1 = scmp.lt.s32.totalorder %s467_s22, %s467_s22 }
  0xb6   :  { %v549_v53 = vpop.eup %548  ;;  %503 = vmatpush3.msra.mxu0 %v380_v56  ;;  %v784_v63 = vmul.f32 10.0, %v547_v54  ;;  %p568_p2 = scmp.lt.s32.totalorder %s566_s24, %s562_s23 }
  0xb7   :  { %504 = vmatprep.subr.mxu0 %v584_v32  ;;  %v234_v5 = vmul.f32 10.0, %v549_v53  ;;  %v335_v53 = vmul.f32 0.0, %v778_v57  ;;  %v342_v57 = vmul.f32 0.0, %v732_v0 }
  0xb8   :  { %505 = vmatpush3.msra.mxu0 %v379_v62  ;;  %v377_v9 = vsub.f32 %v171_v1, %v784_v63  ;;  %v334_v55 = vmul.f32 0.0, %v784_v63  ;;  %v341_v63 = vmul.f32 0.0, %v741_v14  ;;  %p569_p3 = por %p568_p2, %p567_p1 }
  0xb9   :  { %v551_v58 = vpop.eup %550  ;;  %506 = vmatprep.subr.mxu0 %v584_v32  ;;  %v376_v13 = vsub.f32 %v170_v60, %v234_v5  ;;  %v333_v52 = vmul.f32 0.0, %v234_v5  ;;  %v340_v5 = vmul.f32 0.0, %v745_v19 }
  0xba   :  { %v553_v6 = vpop.eup %552  ;;  %507 = vmatpush3.msra.mxu0 %v378_v3  ;;  %v233_v10 = vmul.f32 10.0, %v551_v58  ;;  %v337_v58 = vmul.f32 0.0, %v766_v44  ;;  %v339_v3 = vmul.f32 0.0, %v753_v27  ;;  %p570_p4 = pnand %p569_p3, %p563_p0 }
  0xbb   :  { %508 = vmatprep.subr.mxu0 %v584_v32  ;;  %v232_v15 = vmul.f32 10.0, %v553_v6 }
  0xbc   :  { %509 = vmatpush3.msra.mxu0 %v377_v9  ;;  %v375_v20 = vsub.f32 %v169_v12, %v233_v10  ;;  %v332_v49 = vmul.f32 0.0, %v233_v10 }
  0xbd   :  { %v555_v11 = vpop.eup %554  ;;  %510 = vmatprep.subr.mxu0 %v584_v32  ;;  %v374_v25 = vsub.f32 %v168_v17, %v232_v15  ;;  %v331_v47 = vmul.f32 0.0, %v232_v15  ;;  %v456_v15 = vld [vmem:[#allocation2] sm:$0x1] }
  0xbe   :  { %v557_v16 = vpop.eup %556  ;;  %511 = vmatpush3.msra.mxu0 %v376_v13  ;;  %v231_v21 = vmul.f32 10.0, %v555_v11 }
  0xbf   :  { %512 = vmatprep.subr.mxu0 %v584_v32  ;;  %v230_v26 = vmul.f32 10.0, %v557_v16 }
  0xc0   :  { %513 = vmatpush3.msra.mxu0 %v375_v20  ;;  %v373_v31 = vsub.f32 %v167_v24, %v231_v21  ;;  %v330_v43 = vmul.f32 0.0, %v231_v21 }
  0xc1   :  { %v559_v22 = vpop.eup %558  ;;  %514 = vmatprep.subr.mxu0 %v584_v32  ;;  %v372_v34 = vsub.f32 %v166_v30, %v230_v26  ;;  %v329_v39 = vmul.f32 0.0, %v230_v26 }
  0xc2   :  { %v561_v28 = vpop.eup %560  ;;  %v229_v29 = vmul.f32 10.0, %v559_v22  ;;  %515 = vmatpush3.msra.mxu0 %v374_v25 }
  0xc3   :  { %v228_v35 = vmul.f32 10.0, %v561_v28  ;;  %516 = vmatprep.subr.mxu0 %v584_v32 }
  0xc4   :  { %v328_v33 = vmul.f32 0.0, %v229_v29  ;;  %517 = vmatpush3.msra.mxu0 %v373_v31  ;;  %v371_v41 = vsub.f32 %v165_v37, %v229_v29 }
  0xc5   :  { %518 = vmatprep.subr.mxu0 %v584_v32  ;;  %v370_v40 = vsub.f32 %v164_v42, %v228_v35 }
  0xc6   :  { %v343_v38 = vadd.f32 %v328_v33, %v228_v35  ;;  %519 = vmatpush3.msra.mxu0 %v372_v34 }
  0xc7   :  { %520 = vmatprep.subr.mxu0 %v584_v32 }
  0xc8   :  { %v344_v45 = vadd.f32 %v343_v38, %v329_v39  ;;  %521 = vmatpush3.msra.mxu0 %v371_v41 }
  0xc9   :  { %522 = vmatprep.subr.mxu0 %v584_v32  ;;  %v338_v32 = vmul.f32 0.0, %v758_v36 }
  0xca   :  { %v345_v48 = vadd.f32 %v344_v45, %v330_v43  ;;  %523 = vmatpush3.msra.mxu0 %v370_v40 }
  0xcb   :  { %525 = vmatmul.mubr.f32.vlgmr.msra.gmra.mxu0 %v474_v46 }
  0xcc   :  { %v346_v50 = vadd.f32 %v345_v48, %v331_v47 }
  0xce   :  { %v347_v54 = vadd.f32 %v346_v50, %v332_v49 }
  0xd0   :  { %v348_v56 = vadd.f32 %v347_v54, %v333_v52 }
  0xd2   :  { %v349_v59 = vadd.f32 %v348_v56, %v334_v55 }
  0xd4   :  { %v350_v62 = vadd.f32 %v349_v59, %v335_v53 }
  0xd6   :  { %v351_v1 = vadd.f32 %v350_v62, %v336_v61 }
  0xd8   :  { %v352_v2 = vadd.f32 %v351_v1, %v337_v58 }
  0xda   :  { %v353_v6 = vadd.f32 %v352_v2, %v338_v32 }
  0xdc   :  { %v354_v60 = vadd.f32 %v353_v6, %v339_v3 }
  0xde   :  { %v355_v7 = vadd.f32 %v354_v60, %v340_v5 }
  0xe0   :  { %v356_v9 = vadd.f32 %v355_v7, %v341_v63 }
  0xe2   :  { %v357_v51 = vadd.f32 %v356_v9, %v342_v57 }
  0xe4   :  { %v358_v10 = vrot.slane %v357_v51, 4 }
  0xe6   :  { %v359_v11 = vadd.f32 %v358_v10, %v357_v51 }
  0xe8   :  { %v360_v44 = vrot.slane %v359_v11, 2 }
  0xea   :  { %v361_v12 = vadd.f32 %v360_v44, %v359_v11 }
  0xec   :  { %v362_v4 = vrot.slane %v361_v12, 1 }
  0xee   :  { %v363_v36 = vadd.f32 %v362_v4, %v361_v12 }
 0x18b   :  { %v452_v13 = vpop.f32.mrf.mxu0 }
 0x18c   :  { %v457_v27 = vadd.f32 %v452_v13, %v363_v36 }
 0x18d   :  { %v526_v19 = vpop.f32.mrf.mxu0 }
 0x18e   :  { %v458_v16 = vadd.f32 %v457_v27, %v456_v15 }
 0x190   :  { %459 = vst.msk [vmem:[#allocation2] sm:$0x1] %vm15_vm2, %v458_v16 }
 0x191   :  { %573 = shalt.err (!%p570_p4)
}
 0x192   :  { %469 = dma.vmem_to_hbm [thread:$0]  %s467_s22, 16, %s829_s3, [#allocation3]  }
 0x193   :  { %582 = dma.done.wait [#allocation3], 16  }
 0x194   :  { %583 = vsyncadd [#allocation3], 4294967280 }
 0x195   :  { %473 = vsyncpa [#allocation3], 1 }

</bundles_post_ra>
